<compile_context>
chip_gen: v7x
topology: tpu7x:2x2x1
jax: 0.10.0
libtpu: 0.0.40
codegen_flags: <defaults>
</compile_context>

<pallas_src>
import math

import jax
import jax.numpy as jnp
from jax.experimental import pallas as pl
from jax.experimental.pallas import tpu as pltpu

SW = 30          # self.sliding_window_size
STRIDE = 2       # unfold stride
TOPK = 3         # self.top_k_chunks


# ----------------------------------------------------------------------------- kernel
def skl_chunk_score_kernel(s_t_ref, rp_ref, q_ref, dt_ref, qm_ref, dm_ref,
                           out_ref, stack_ref):
    # s_t_ref   (Dp, Wp) bf16 — batch-invariant 0/1 window matrix, pad cols zeroed
    #                            (constant block -> stays VMEM resident).
    # rp_ref    (4*K*Q, 1) f32 — per-row (row = k*Q + q) parameter table:
    #                            [0:KQ]=mu, [KQ:2KQ]=-1/(2*sigma^2),
    #                            [2KQ:3KQ]=kernel_mult[0], [3KQ:4KQ]=dense weight.
    # q_ref     (nb, Q, E) f32, dt_ref (nb, E, Dp) f32 (doc embeddings transposed)
    # qm_ref    (nb, Q, 1) f32, dm_ref (nb, 1, Dp) f32
    # out_ref   (nb, 1, Wp) f32
    # stack_ref (nb*K*Q, Dp) bf16 pooling-stack scratch.
    nb, Q, _ = q_ref.shape
    Dp = dt_ref.shape[2]
    Wp = out_ref.shape[2]
    KQ = rp_ref.shape[0] // 4
    K = KQ // Q

    q = q_ref[...]                                            # (nb, Q, E) f32
    dt = dt_ref[...]                                          # (nb, E, Dp) f32
    qmask = qm_ref[...]                                       # (nb, Q, 1)
    dmask = dm_ref[...]                                       # (nb, 1, Dp)

    # CosineMatrixAttention — kept fully in f32 (exact-match kernel sigma=0.001 is
    # numerically fragile); eps on the norms matches AllenNLP.
    q_norm = jnp.sqrt(jnp.sum(q * q, axis=-1, keepdims=True)) + 1e-13   # (nb,Q,1)
    d_norm = jnp.sqrt(jnp.sum(dt * dt, axis=1, keepdims=True)) + 1e-13  # (nb,1,Dp)
    cos = jnp.einsum('bqe,bed->bqd', q / q_norm, dt / d_norm,
                     preferred_element_type=jnp.float32)      # (nb, Q, Dp) f32

    rp = rp_ref[...]                                          # (4*KQ, 1)
    mu_c = rp[0 * KQ:1 * KQ, :]                               # (KQ, 1)
    coef_c = rp[1 * KQ:2 * KQ, :]
    kmult_c = rp[2 * KQ:3 * KQ, :]
    dense_c = rp[3 * KQ:4 * KQ, :]

    # All K Gaussian kernels at once: replicate cos along the row axis (row=k*Q+q),
    # apply per-row mu/coef, doc-mask, cast to bf16 and make ONE aligned store into
    # the pooling stack.
    cos_rep = jnp.concatenate([cos] * K, axis=1)              # (nb, K*Q, Dp)
    diff = cos_rep - mu_c
    km = jnp.exp(diff * diff * coef_c) * dmask                # (nb, K*Q, Dp) f32
    stack_ref[...] = km.astype(jnp.bfloat16).reshape(nb * KQ, Dp)

    # ONE fused sliding-window pooling matmul over all batch rows/kernels/queries.
    s_t = s_t_ref[...]                                        # (Dp, Wp) bf16
    pooled = jnp.dot(stack_ref[...], s_t,
                     preferred_element_type=jnp.float32)      # (nb*K*Q, Wp)
    pooled = pooled.reshape(nb, KQ, Wp)

    # Non-zero-length indicator is query/kernel independent == windowed doc mask.
    lengths = jnp.dot(dmask.reshape(nb, Dp).astype(jnp.bfloat16), s_t,
                      preferred_element_type=jnp.float32)     # (nb, Wp)
    len_pos = (lengths > 0.0).astype(jnp.float32).reshape(nb, 1, Wp)
    qmask_rep = jnp.concatenate([qmask] * K, axis=1)          # (nb, K*Q, 1)
    valid = qmask_rep * len_pos                               # (nb, K*Q, Wp)

    # log saturation + masking + sum over (k, q) with the dense(K->1) weight.
    sat = jnp.log(jnp.maximum(pooled * kmult_c, 1e-10)) * valid
    out_ref[...] = jnp.sum(sat * dense_c, axis=1).reshape(nb, 1, Wp)


def make_window_matrix(Dp, W, Wp):
    # s_t[d, w] = 1 iff STRIDE*w <= d < STRIDE*w + SW and w < W
    # (== unfold + window-sum; columns >= W are zero so lane padding is inert).
    d_idx = jnp.arange(Dp, dtype=jnp.int32)[:, None]
    w_idx = jnp.arange(Wp, dtype=jnp.int32)[None, :]
    in_win = (d_idx >= STRIDE * w_idx) & (d_idx < STRIDE * w_idx + SW)
    return (in_win & (w_idx < W)).astype(jnp.bfloat16)        # 0/1 exact in bf16


def chunk_scores_pallas(q_ctx, d_ctx, q_mask, d_mask, mu, coef, kmult0, dense_w,
                        *, block_b=64):
    """Returns per-window chunk scores (B, W) for the log-saturation SKL scorer."""
    B, Q, E = q_ctx.shape
    Dp = d_ctx.shape[1]
    K = mu.shape[1]
    W = (Dp - SW) // STRIDE + 1
    Wp = ((max(W, 1) + 127) // 128) * 128                     # lane-dense output width

    # Batch blocking: nb rows per grid step (big nb amortizes per-step overhead);
    # keep >=2 grid steps when the batch is large enough so v7x's two TensorCores
    # both get work via the "parallel" batch axis.
    nb = min(block_b, B)
    if B > 8 and (B + nb - 1) // nb < 2:
        nb = (B + 1) // 2
    Bp = ((B + nb - 1) // nb) * nb
    if Bp > B:
        pad = Bp - B
        q_ctx = jnp.pad(q_ctx, ((0, pad), (0, 0), (0, 0)))
        d_ctx = jnp.pad(d_ctx, ((0, pad), (0, 0), (0, 0)))
        q_mask = jnp.pad(q_mask, ((0, pad), (0, 0)))
        d_mask = jnp.pad(d_mask, ((0, pad), (0, 0)))

    # Doc embeddings pre-transposed (cheap XLA transpose): doc positions on lanes,
    # cosine MXU RHS needs no in-kernel transpose.
    d_t = jnp.transpose(d_ctx, (0, 2, 1))                     # (Bp, E, Dp)

    s_t = make_window_matrix(Dp, W, Wp)                       # (Dp, Wp) bf16
    row_params = jnp.concatenate([                            # (4*K*Q, 1) f32
        jnp.repeat(mu[0], Q),
        jnp.repeat(coef[0], Q),
        jnp.repeat(kmult0[0], Q),
        jnp.repeat(dense_w[0], Q)]).astype(jnp.float32)[:, None]

    out = pl.pallas_call(
        skl_chunk_score_kernel,
        out_shape=jax.ShapeDtypeStruct((Bp, 1, Wp), jnp.float32),
        grid=(Bp // nb,),
        in_specs=[
            pl.BlockSpec((Dp, Wp), lambda i: (0, 0)),          # window matrix (resident)
            pl.BlockSpec((4 * K * Q, 1), lambda i: (0, 0)),    # per-row params (resident)
            pl.BlockSpec((nb, Q, E), lambda i: (i, 0, 0)),     # query embeddings
            pl.BlockSpec((nb, E, Dp), lambda i: (i, 0, 0)),    # doc embeddings (transposed)
            pl.BlockSpec((nb, Q, 1), lambda i: (i, 0, 0)),     # query mask
            pl.BlockSpec((nb, 1, Dp), lambda i: (i, 0, 0)),    # doc mask
        ],
        out_specs=pl.BlockSpec((nb, 1, Wp), lambda i: (i, 0, 0)),
        scratch_shapes=[pltpu.VMEM((nb * K * Q, Dp), jnp.bfloat16)],
        compiler_params=pltpu.CompilerParams(dimension_semantics=("parallel",)),
        # TODO(synk): for very long documents / large nb, raise vmem_limit_bytes
        # (watch v7x's 64 MiB physical VMEM) and/or add an inner "arbitrary" Dp
        # grid axis with a (K*Q, Wp) accumulator.
    )(s_t, row_params, q_ctx, d_t, q_mask[..., None], d_mask[:, None, :])

    # Slice off padded batch rows AND padded lane columns BEFORE the ==0 -> -9900
    # replacement / top-k neighbor gather in the caller.
    return out[:B, 0, :W]                                      # (B, W)


# ----------------------------------------------------------------------------- glue
def get_positional_features(dimensions, max_length,
                            min_timescale=1.0, max_timescale=1.0e4):
    num_timescales = dimensions // 2
    timesteps = jnp.arange(max_length, dtype=jnp.float32)
    timescale_range = jnp.arange(num_timescales, dtype=jnp.float32)
    log_inc = math.log(float(max_timescale) / float(min_timescale)) / float(num_timescales - 1)
    inverse_timescales = min_timescale * jnp.exp(timescale_range * -log_inc)
    scaled_time = timesteps[:, None] * inverse_timescales[None, :]
    sinusoids = jnp.concatenate([jnp.sin(scaled_time), jnp.cos(scaled_time)], axis=1)
    if dimensions % 2 != 0:
        sinusoids = jnp.concatenate(
            [sinusoids, jnp.zeros((max_length, 1), jnp.float32)], axis=1)
    return sinusoids[None]   # (1, max_length, dimensions)


def init_params(key, emb_size, n_kernels, max_length=256):
    k_dense, = jax.random.split(key, 1)
    mu = jnp.array([[1.0, 0.9, 0.7, 0.5, 0.3, 0.1, -0.1, -0.3]], jnp.float32)[:, :n_kernels]
    sigma = jnp.array([[0.001, 0.1, 0.1, 0.1, 0.1, 0.1, 0.1, 0.1]], jnp.float32)[:, :n_kernels]
    pos = get_positional_features(emb_size, max_length)
    return {
        "mu": mu,
        "sigma": sigma,
        "pos_q": pos,
        "pos_d": pos,                                           # use_diff_posencoding = False
        "kernel_mult0": jnp.ones((1, n_kernels), jnp.float32),  # kernel_mult[0]
        "dense_w": jax.random.uniform(k_dense, (1, n_kernels),
                                      minval=-0.014, maxval=0.014, dtype=jnp.float32),
        "chunk_scoring": jnp.ones((1, TOPK * 5), jnp.float32),
    }


def skl_forward(params, query_embeddings, document_embeddings,
                query_pad_oov_mask, document_pad_oov_mask,
                query_idfs=None, document_idfs=None):
    B, Q, E = query_embeddings.shape
    D = document_embeddings.shape[1]

    # forward_representation: add positional encodings (use_pos_encoding=True).
    q_ctx = query_embeddings + params["pos_q"][:, :Q, :]
    d_ctx = document_embeddings + params["pos_d"][:, :D, :]
    # TODO(synk): ConformerEncoder/ConformerEncoderLayer contextualizer is an external
    # class not defined in this module; treated as identity here.

    # Pad doc side to >= sliding_window_size (equivalent to F.pad on the masked
    # kernel results, since masked positions contribute exactly 0).
    q_mask = query_pad_oov_mask.astype(jnp.float32)
    d_mask = document_pad_oov_mask.astype(jnp.float32)
    Dp = max(D, SW)
    if Dp > D:
        d_ctx = jnp.pad(d_ctx, ((0, 0), (0, Dp - D), (0, 0)))
        d_mask = jnp.pad(d_mask, ((0, 0), (0, Dp - D)))

    # Precompute the Gaussian coefficient outside the kernel (no in-kernel divides).
    coef = -1.0 / (2.0 * params["sigma"] * params["sigma"])    # (1, K)

    score = chunk_scores_pallas(q_ctx, d_ctx, q_mask, d_mask,
                                params["mu"], coef,
                                params["kernel_mult0"], params["dense_w"])   # (B, W)

    # ----- top-k non-overlapping chunk selection (plain-JAX glue) -----
    W = score.shape[1]
    if W < TOPK:
        score = jnp.pad(score, ((0, 0), (0, TOPK - W)))
        W = TOPK
    score = jnp.where(score == 0.0, -9900.0, score)
    orig_score = score

    r = jnp.arange(W)
    max_per_region = score
    idx_list = []
    for c in range(TOPK):
        best = jnp.argmax(max_per_region, axis=1)                        # (B,)
        idx_list.append(best)
        region = jnp.abs(r[None, :] - best[:, None]) < (SW / 2)
        max_per_region = jnp.where(region, -10001.0 - c, max_per_region)
    top_idx = jnp.stack(idx_list, axis=1)                                # (B, 3)

    neighbors = jnp.concatenate(
        [top_idx, top_idx - 1, top_idx + 1, top_idx - 2, top_idx + 2], axis=1)
    neighbors = jnp.clip(neighbors, 0, W - 1)
    top_k = jnp.take_along_axis(orig_score, neighbors, axis=1)           # (B, 15)
    top_k = jnp.where(top_k <= -9900.0, 0.0, top_k)
    final_score = jnp.sum(top_k * params["chunk_scoring"], axis=1)       # (B,)
    return final_score


# ----------------------------------------------------------------------------- main
if __name__ == "__main__":
    B, Q, D, E, K = 2, 8, 64, 32, 8

    key = jax.random.PRNGKey(0)
    kp, kq, kd, ki = jax.random.split(key, 4)

    params = init_params(kp, E, K, max_length=max(Q, D) + 16)

    query_embeddings = jax.random.normal(kq, (B, Q, E), jnp.float32)
    document_embeddings = jax.random.normal(kd, (B, D, E), jnp.float32)

    query_pad_oov_mask = jnp.ones((B, Q), jnp.float32).at[1, Q - 1].set(0.0)
    doc_lens = jnp.array([[D], [50]])
    document_pad_oov_mask = (jnp.arange(D)[None, :] < doc_lens).astype(jnp.float32)

    query_idfs = jax.random.uniform(ki, (B, Q, 1), dtype=jnp.float32)   # unused (log sat)
    document_idfs = jnp.zeros((B, D, 1), jnp.float32)

    score = skl_forward(params, query_embeddings, document_embeddings,
                        query_pad_oov_mask, document_pad_oov_mask,
                        query_idfs, document_idfs)
    score = jax.block_until_ready(score)
    assert score.shape == (B,)
    print("KERNEL_OK")
</pallas_src>

<mosaic_0001>
module attributes {stable_mosaic.version = 11 : i64} {
  func.func @skl_chunk_score_kernel(%arg0: i32, %arg1: memref<64x128xbf16, #tpu.memory_space<vmem>>, %arg2: memref<256x1xf32, #tpu.memory_space<vmem>>, %arg3: memref<2x8x32xf32, #tpu.memory_space<vmem>>, %arg4: memref<2x32x64xf32, #tpu.memory_space<vmem>>, %arg5: memref<2x8x1xf32, #tpu.memory_space<vmem>>, %arg6: memref<2x1x64xf32, #tpu.memory_space<vmem>>, %arg7: memref<2x1x128xf32, #tpu.memory_space<vmem>>, %arg8: memref<128x64xbf16, #tpu.memory_space<vmem>>) attributes {dimension_semantics = [#tpu.dimension_semantics<parallel>], iteration_bounds = array<i64: 1>, scalar_prefetch = 0 : i64, scratch_operands = 1 : i64, tpu.core_type = #tpu.core_type<tc>, window_params = [{pipeline_mode = #tpu.pipeline_mode<synchronous>, transform_indices = @transform_0, window_bounds = array<i64: 64, 128>}, {pipeline_mode = #tpu.pipeline_mode<synchronous>, transform_indices = @transform_1, window_bounds = array<i64: 256, 1>}, {transform_indices = @transform_2, window_bounds = array<i64: 2, 8, 32>}, {transform_indices = @transform_3, window_bounds = array<i64: 2, 32, 64>}, {transform_indices = @transform_4, window_bounds = array<i64: 2, 8, 1>}, {transform_indices = @transform_5, window_bounds = array<i64: 2, 1, 64>}, {transform_indices = @transform_6, window_bounds = array<i64: 2, 1, 128>}]} {
    %c0 = arith.constant 0 : index
    %c0_0 = arith.constant 0 : index
    %c0_1 = arith.constant 0 : index
    %0 = vector.load %arg3[%c0, %c0_0, %c0_1] : memref<2x8x32xf32, #tpu.memory_space<vmem>>, vector<2x8x32xf32>
    %c0_2 = arith.constant 0 : index
    %c0_3 = arith.constant 0 : index
    %c0_4 = arith.constant 0 : index
    %1 = vector.load %arg4[%c0_2, %c0_3, %c0_4] : memref<2x32x64xf32, #tpu.memory_space<vmem>>, vector<2x32x64xf32>
    %c0_5 = arith.constant 0 : index
    %c0_6 = arith.constant 0 : index
    %c0_7 = arith.constant 0 : index
    %2 = vector.load %arg5[%c0_5, %c0_6, %c0_7] : memref<2x8x1xf32, #tpu.memory_space<vmem>>, vector<2x8x1xf32>
    %c0_8 = arith.constant 0 : index
    %c0_9 = arith.constant 0 : index
    %c0_10 = arith.constant 0 : index
    %3 = vector.load %arg6[%c0_8, %c0_9, %c0_10] : memref<2x1x64xf32, #tpu.memory_space<vmem>>, vector<2x1x64xf32>
    %4 = arith.mulf %0, %0 : vector<2x8x32xf32>
    %cst = arith.constant dense<0.000000e+00> : vector<2x8xf32>
    %5 = vector.multi_reduction <add>, %4, %cst [2] : vector<2x8x32xf32> to vector<2x8xf32>
    %6 = vector.shape_cast %5 : vector<2x8xf32> to vector<2x8x1xf32>
    %7 = math.sqrt %6 : vector<2x8x1xf32>
    %cst_11 = arith.constant 9.99999982E-14 : f32
    %8 = vector.broadcast %cst_11 : f32 to vector<2x8x1xf32>
    %9 = arith.addf %7, %8 : vector<2x8x1xf32>
    %10 = arith.mulf %1, %1 : vector<2x32x64xf32>
    %cst_12 = arith.constant dense<0.000000e+00> : vector<2x64xf32>
    %11 = vector.multi_reduction <add>, %10, %cst_12 [1] : vector<2x32x64xf32> to vector<2x64xf32>
    %12 = vector.shape_cast %11 : vector<2x64xf32> to vector<2x1x64xf32>
    %13 = math.sqrt %12 : vector<2x1x64xf32>
    %cst_13 = arith.constant 9.99999982E-14 : f32
    %14 = vector.broadcast %cst_13 : f32 to vector<2x1x64xf32>
    %15 = arith.addf %13, %14 : vector<2x1x64xf32>
    %16 = vector.broadcast %9 : vector<2x8x1xf32> to vector<2x8x32xf32>
    %17 = arith.divf %0, %16 : vector<2x8x32xf32>
    %18 = vector.broadcast %15 : vector<2x1x64xf32> to vector<2x32x64xf32>
    %19 = arith.divf %1, %18 : vector<2x32x64xf32>
    "tpu.trace_start"() <{level = 10 : i32, message = "bqe,bed->bqd"}> : () -> ()
    %cst_14 = arith.constant dense<0.000000e+00> : vector<2x8x64xf32>
    %20 = tpu.matmul %17, %19, %cst_14 {dimension_numbers = #tpu.dot_dimension_numbers<[2], [1], [1], [2], [0, 0, 0, 1, 1, 2], [0], [0]>} : vector<2x8x32xf32>, vector<2x32x64xf32>, vector<2x8x64xf32> -> vector<2x8x64xf32>
    "tpu.trace_stop"() : () -> ()
    %c0_15 = arith.constant 0 : index
    %c0_16 = arith.constant 0 : index
    %21 = vector.load %arg2[%c0_15, %c0_16] : memref<256x1xf32, #tpu.memory_space<vmem>>, vector<256x1xf32>
    %22 = vector.extract_strided_slice %21 {offsets = [0, 0], sizes = [64, 1], strides = [1, 1]} : vector<256x1xf32> to vector<64x1xf32>
    %23 = vector.extract_strided_slice %21 {offsets = [64, 0], sizes = [64, 1], strides = [1, 1]} : vector<256x1xf32> to vector<64x1xf32>
    %24 = vector.extract_strided_slice %21 {offsets = [128, 0], sizes = [64, 1], strides = [1, 1]} : vector<256x1xf32> to vector<64x1xf32>
    %25 = vector.extract_strided_slice %21 {offsets = [192, 0], sizes = [64, 1], strides = [1, 1]} : vector<256x1xf32> to vector<64x1xf32>
    %26 = tpu.concatenate %20, %20, %20, %20, %20, %20, %20, %20 in 1 : vector<2x8x64xf32>, vector<2x8x64xf32>, vector<2x8x64xf32>, vector<2x8x64xf32>, vector<2x8x64xf32>, vector<2x8x64xf32>, vector<2x8x64xf32>, vector<2x8x64xf32> -> vector<2x64x64xf32>
    %27 = vector.shape_cast %22 : vector<64x1xf32> to vector<1x64x1xf32>
    %28 = vector.broadcast %27 : vector<1x64x1xf32> to vector<2x64x64xf32>
    %29 = arith.subf %26, %28 : vector<2x64x64xf32>
    %30 = arith.mulf %29, %29 : vector<2x64x64xf32>
    %31 = vector.shape_cast %23 : vector<64x1xf32> to vector<1x64x1xf32>
    %32 = vector.broadcast %31 : vector<1x64x1xf32> to vector<2x64x64xf32>
    %33 = arith.mulf %30, %32 : vector<2x64x64xf32>
    %34 = math.exp %33 : vector<2x64x64xf32>
    %35 = vector.broadcast %3 : vector<2x1x64xf32> to vector<2x64x64xf32>
    %36 = arith.mulf %34, %35 : vector<2x64x64xf32>
    %37 = arith.truncf %36 : vector<2x64x64xf32> to vector<2x64x64xbf16>
    %38 = vector.shape_cast %37 : vector<2x64x64xbf16> to vector<128x64xbf16>
    %c0_17 = arith.constant 0 : index
    %c0_18 = arith.constant 0 : index
    %39 = vector.load %arg8[%c0_17, %c0_18] : memref<128x64xbf16, #tpu.memory_space<vmem>>, vector<128x64xbf16>
    tpu.vector_store %arg8[%c0_17, %c0_18], %38 {strides = array<i32>} : memref<128x64xbf16, #tpu.memory_space<vmem>>, vector<128x64xbf16>,
    %c0_19 = arith.constant 0 : index
    %c0_20 = arith.constant 0 : index
    %40 = vector.load %arg1[%c0_19, %c0_20] : memref<64x128xbf16, #tpu.memory_space<vmem>>, vector<64x128xbf16>
    %c0_21 = arith.constant 0 : index
    %c0_22 = arith.constant 0 : index
    %41 = vector.load %arg8[%c0_21, %c0_22] : memref<128x64xbf16, #tpu.memory_space<vmem>>, vector<128x64xbf16>
    %cst_23 = arith.constant dense<0.000000e+00> : vector<128x128xf32>
    %42 = tpu.matmul %41, %40, %cst_23 {dimension_numbers = #tpu.dot_dimension_numbers<[1], [0], [0], [1], [0, 0, 1, 1], [], []>} : vector<128x64xbf16>, vector<64x128xbf16>, vector<128x128xf32> -> vector<128x128xf32>
    %43 = vector.shape_cast %42 : vector<128x128xf32> to vector<2x64x128xf32>
    %44 = vector.shape_cast %3 : vector<2x1x64xf32> to vector<2x64xf32>
    %45 = arith.truncf %44 : vector<2x64xf32> to vector<2x64xbf16>
    %cst_24 = arith.constant dense<0.000000e+00> : vector<2x128xf32>
    %46 = tpu.matmul %45, %40, %cst_24 {dimension_numbers = #tpu.dot_dimension_numbers<[1], [0], [0], [1], [0, 0, 1, 1], [], []>} : vector<2x64xbf16>, vector<64x128xbf16>, vector<2x128xf32> -> vector<2x128xf32>
    %cst_25 = arith.constant 0.000000e+00 : f32
    %47 = vector.broadcast %cst_25 : f32 to vector<2x128xf32>
    %48 = arith.cmpf ogt, %46, %47 : vector<2x128xf32>
    %49 = arith.extui %48 : vector<2x128xi1> to vector<2x128xi32>
    %50 = arith.sitofp %49 : vector<2x128xi32> to vector<2x128xf32>
    %51 = vector.shape_cast %50 : vector<2x128xf32> to vector<2x1x128xf32>
    %52 = tpu.concatenate %2, %2, %2, %2, %2, %2, %2, %2 in 1 : vector<2x8x1xf32>, vector<2x8x1xf32>, vector<2x8x1xf32>, vector<2x8x1xf32>, vector<2x8x1xf32>, vector<2x8x1xf32>, vector<2x8x1xf32>, vector<2x8x1xf32> -> vector<2x64x1xf32>
    %53 = vector.broadcast %52 : vector<2x64x1xf32> to vector<2x64x128xf32>
    %54 = vector.broadcast %51 : vector<2x1x128xf32> to vector<2x64x128xf32>
    %55 = arith.mulf %53, %54 : vector<2x64x128xf32>
    %56 = vector.shape_cast %24 : vector<64x1xf32> to vector<1x64x1xf32>
    %57 = vector.broadcast %56 : vector<1x64x1xf32> to vector<2x64x128xf32>
    %58 = arith.mulf %43, %57 : vector<2x64x128xf32>
    %cst_26 = arith.constant 1.000000e-10 : f32
    %59 = vector.broadcast %cst_26 : f32 to vector<2x64x128xf32>
    %60 = arith.maximumf %58, %59 : vector<2x64x128xf32>
    %61 = math.log %60 : vector<2x64x128xf32>
    %62 = arith.mulf %61, %55 : vector<2x64x128xf32>
    %63 = vector.shape_cast %25 : vector<64x1xf32> to vector<1x64x1xf32>
    %64 = vector.broadcast %63 : vector<1x64x1xf32> to vector<2x64x128xf32>
    %65 = arith.mulf %62, %64 : vector<2x64x128xf32>
    %cst_27 = arith.constant dense<0.000000e+00> : vector<2x128xf32>
    %66 = vector.multi_reduction <add>, %65, %cst_27 [1] : vector<2x64x128xf32> to vector<2x128xf32>
    %67 = vector.shape_cast %66 : vector<2x128xf32> to vector<2x1x128xf32>
    %c0_28 = arith.constant 0 : index
    %c0_29 = arith.constant 0 : index
    %c0_30 = arith.constant 0 : index
    %68 = vector.load %arg7[%c0_28, %c0_29, %c0_30] : memref<2x1x128xf32, #tpu.memory_space<vmem>>, vector<2x1x128xf32>
    tpu.vector_store %arg7[%c0_28, %c0_29, %c0_30], %67 {strides = array<i32>} : memref<2x1x128xf32, #tpu.memory_space<vmem>>, vector<2x1x128xf32>,
    return
  }
  func.func @transform_0(%arg0: i32) -> (i32, i32) {
    %c0_i32 = arith.constant 0 : i32
    %c0_i32_0 = arith.constant 0 : i32
    %c0_i32_1 = arith.constant 0 : i32
    return %c0_i32, %c0_i32_0 : i32, i32
  }
  func.func @transform_1(%arg0: i32) -> (i32, i32) {
    %c0_i32 = arith.constant 0 : i32
    %c0_i32_0 = arith.constant 0 : i32
    %c0_i32_1 = arith.constant 0 : i32
    return %c0_i32, %c0_i32_0 : i32, i32
  }
  func.func @transform_2(%arg0: i32) -> (i32, i32, i32) {
    %c0_i32 = arith.constant 0 : i32
    %c0_i32_0 = arith.constant 0 : i32
    %c0_i32_1 = arith.constant 0 : i32
    return %arg0, %c0_i32, %c0_i32_0 : i32, i32, i32
  }
  func.func @transform_3(%arg0: i32) -> (i32, i32, i32) {
    %c0_i32 = arith.constant 0 : i32
    %c0_i32_0 = arith.constant 0 : i32
    %c0_i32_1 = arith.constant 0 : i32
    return %arg0, %c0_i32, %c0_i32_0 : i32, i32, i32
  }
  func.func @transform_4(%arg0: i32) -> (i32, i32, i32) {
    %c0_i32 = arith.constant 0 : i32
    %c0_i32_0 = arith.constant 0 : i32
    %c0_i32_1 = arith.constant 0 : i32
    return %arg0, %c0_i32, %c0_i32_0 : i32, i32, i32
  }
  func.func @transform_5(%arg0: i32) -> (i32, i32, i32) {
    %c0_i32 = arith.constant 0 : i32
    %c0_i32_0 = arith.constant 0 : i32
    %c0_i32_1 = arith.constant 0 : i32
    return %arg0, %c0_i32, %c0_i32_0 : i32, i32, i32
  }
  func.func @transform_6(%arg0: i32) -> (i32, i32, i32) {
    %c0_i32 = arith.constant 0 : i32
    %c0_i32_0 = arith.constant 0 : i32
    %c0_i32_1 = arith.constant 0 : i32
    return %arg0, %c0_i32, %c0_i32_0 : i32, i32, i32
  }
}

</mosaic_0001>

<bundles_post_ra>
// kernel: tpu_custom_call.1
= control target key start
LH: loop header
LB: loop body
LE: loop exit
PB: predicated region body
PF: predicated region fallthrough
CT: control target
= control target key end

     0   :  { %vm41_vm0 = vcmask 261120   ;;  %v1224_v5 = vmov 0   ;;  %vm72_vm1 = vcmask 523264   ;;  %s1655_s0 = inlined_call_operand.vmem [shape: bf16[64,128], index: 0, kind: input, shape index: {}]   ;;  %s1656_s1 = inlined_call_operand.vmem [shape: f32[256,1], index: 1, kind: input, shape index: {}]   ;;  %s1657_s2 = inlined_call_operand.vmem [shape: f32[2,8,32], index: 2, kind: input, shape index: {}]   ;;  %s1658_s3 = inlined_call_operand.vmem [shape: f32[2,32,64], index: 3, kind: input, shape index: {}]   ;;  %s1659_s4 = inlined_call_operand.vmem [shape: f32[2,8,1], index: 4, kind: input, shape index: {}]   ;;  %s1660_s5 = inlined_call_operand.vmem [shape: f32[2,1,64], index: 5, kind: input, shape index: {}]   ;;  %s1661_s6 = inlined_call_operand.hbm [shape: f32[2,1,128], index: 6, kind: output, shape index: {}]  }
   0x1   :  { %v1270_v0 = vld [vmem:[%s1657_s2] sm:$0xff]  ;;  %v1275_v1 = vld [vmem:[%s1657_s2 + $0x8] sm:$0xff]  ;;  %1114 = vset.pattern.permute.xlu1 %v1224_v5  ;;  %1115 = vset.pattern.permute.xlu0 %v1224_v5  ;;  %v1297_v8 = vld [vmem:[%s1658_s3 + $0x10] sm:$0xff] }
   0x2   :  { %v275_v2 = vld [vmem:[%s1656_s1] sm:$0xff]  ;;  %v39_v3 = vmul.f32 %v1270_v0, %v1270_v0  ;;  %v40_v4 = vmul.f32 %v1275_v1, %v1275_v1  ;;  %v1292_v7 = vld [vmem:[%s1658_s3 + $0x8] sm:$0xff]  ;;  %v30_v11 = vld [vmem:[%s1658_s3 + $0x18] sm:$0xff]  ;;  %v66_v15 = vmul.f32 %v1297_v8, %v1297_v8 }
   0x3   :  { %309 = vperm.xlu1 %1114, %v275_v2   ;;  %v1287_v6 = vld [vmem:[%s1658_s3] sm:$0xff]  ;;  %v276_v10 = vld [vmem:[%s1656_s1 + $0x8] sm:$0xff]  ;;  %v65_v13 = vmul.f32 %v1292_v7, %v1292_v7  ;;  %v67_v16 = vmul.f32 %v30_v11, %v30_v11  ;;  %v278_v21 = vld [vmem:[%s1656_s1 + $0x18] sm:$0xff] }
   0x4   :  { %v42_v9 = vsel %vm41_vm0, %v39_v3, 0.0  ;;  %v64_v12 = vmul.f32 %v1287_v6, %v1287_v6  ;;  %v45_v14 = vsel %vm41_vm0, %v40_v4, 0.0  ;;  %v76_v20 = vsel %vm72_vm1, %v66_v15, 0.0 }
   0x5   :  { %43 = vadd.xlane.f32.xlu0 %v42_v9  ;;  %v74_v18 = vsel %vm72_vm1, %v65_v13, 0.0  ;;  %v78_v22 = vsel %vm72_vm1, %v67_v16, 0.0 }
   0x6   :  { %v73_v17 = vsel %vm72_vm1, %v64_v12, 0.0 }
   0x7   :  { %314 = vperm.xlu1 %1114, %v276_v10   ;;  %v75_v19 = vadd.f32 %v74_v18, %v73_v17 }
   0x9   :  { %46 = vadd.xlane.f32.xlu0 %v45_v14  ;;  %v77_v23 = vadd.f32 %v76_v20, %v75_v19 }
   0xa   :  { %11 = vsyncpa [#allocation4], 0  ;;  %v283_v25 = vld [vmem:[%s1656_s1 + $0x40] sm:$0xff]  ;;  %v284_v30 = vld [vmem:[%s1656_s1 + $0x48] sm:$0xff]  ;;  %v1225_v42 = vmov 0.0|0.0   ;;  %vm1226_vm4 = vmmov 0  }
   0xb   :  { %324 = vperm.xlu1 %1114, %v278_v21   ;;  %v79_v24 = vadd.f32 %v78_v22, %v77_v23  ;;  %v285_v33 = vld [vmem:[%s1656_s1 + $0x50] sm:$0xff]  ;;  %v286_v34 = vld [vmem:[%s1656_s1 + $0x58] sm:$0xff]  ;;  %v279_v35 = vld [vmem:[%s1656_s1 + $0x20] sm:$0xff]  ;;  %1094 = vmatprep.subr.bf16.mxu1 %v1225_v42  ;;  %v1227_v45 = vmov 0.0   ;;  %vm679_vm11 = vcmask 1041409  }
   0xc   :  { %v280_v39 = vld [vmem:[%s1656_s1 + $0x28] sm:$0xff]  ;;  %v281_v44 = vld [vmem:[%s1656_s1 + $0x30] sm:$0xff]  ;;  %1044 = vmatprep.mubr.msk.f32.mxu1 %vm1226_vm4, %v1227_v45  ;;  %v282_v46 = vld [vmem:[%s1656_s1 + $0x38] sm:$0xff] }
   0xd   :  { %v80_v26 = vrot.slane %v79_v24, 4  ;;  %v287_v47 = vld [vmem:[%s1656_s1 + $0x60] sm:$0xff]  ;;  %v288_v53 = vld [vmem:[%s1656_s1 + $0x68] sm:$0xff]  ;;  %v290_v57 = vld [vmem:[%s1656_s1 + $0x78] sm:$0xff] }
   0xe   :  { %v1359_v55 = vld [vmem:[%s1655_s0] sm:$0xff]   ;;  %v1369_v58 = vld [vmem:[%s1655_s0 + $0x8] sm:$0xff]   ;;  %v1380_v60 = vld [vmem:[%s1655_s0 + $0x10] sm:$0xff]  }
   0xf   :  { %381 = vperm.xlu1 %1114, %v283_v25   ;;  %v81_v27 = vadd.f32 %v80_v26, %v79_v24  ;;  %1058 = vmatprep.subr.bf16.mxu0 %v1359_v55  ;;  %v292_v59 = vld [vmem:[%s1656_s1 + $0x88] sm:$0xff]  ;;  %v294_v61 = vld [vmem:[%s1656_s1 + $0x98] sm:$0xff]  ;;  %v277_v3 = vld [vmem:[%s1656_s1 + $0x10] sm:$0xff] }
  0x10   :  { %1059 = vmatpush3.bf16.msra.mxu0 %v1359_v55  ;;  %v1390_v62 = vld [vmem:[%s1655_s0 + $0x18] sm:$0xff]   ;;  %v296_v63 = vld [vmem:[%s1656_s1 + $0xa8] sm:$0xff]  ;;  %v289_v5 = vld [vmem:[%s1656_s1 + $0x70] sm:$0xff] }
  0x11   :  { %v82_v28 = vrot.slane %v81_v27, 2  ;;  %1060 = vmatprep.subr.bf16.mxu0 %v1369_v58  ;;  %v298_v2 = vld [vmem:[%s1656_s1 + $0xb8] sm:$0xff]  ;;  %v36_v4 = vld [vmem:[%s1659_s4 + $0x8] sm:$0xff]  ;;  %v1439_v14 = vld [vmem:[%s1658_s3 + $0x30] sm:$0xff] }
  0x12   :  { %v1424_v9 = vld [vmem:[%s1658_s3 + $0x28] sm:$0xff]  ;;  %v302_v10 = vld [vmem:[%s1656_s1 + $0xd8] sm:$0xff]  ;;  %v295_v16 = vld [vmem:[%s1656_s1 + $0xa0] sm:$0xff]  ;;  %v70_v17 = vmul.f32 %v1439_v14, %v1439_v14 }
  0x13   :  { %v83_v29 = vadd.f32 %v82_v28, %v81_v27  ;;  %386 = vperm.xlu1 %1114, %v284_v30   ;;  %v69_v13 = vmul.f32 %v1424_v9, %v1424_v9  ;;  %v304_v15 = vld [vmem:[%s1656_s1 + $0xe8] sm:$0xff]  ;;  %v1454_v20 = vld [vmem:[%s1658_s3 + $0x38] sm:$0xff]  ;;  %v297_v22 = vld [vmem:[%s1656_s1 + $0xb0] sm:$0xff] }
  0x14   :  { %1061 = vmatpush3.bf16.msra.mxu0 %v1369_v58  ;;  %v306_v21 = vld [vmem:[%s1656_s1 + $0xf8] sm:$0xff]  ;;  %v71_v24 = vmul.f32 %v1454_v20, %v1454_v20  ;;  %v89_v25 = vsel %vm72_vm1, %v70_v17, 0.0  ;;  %v35_v26 = vld [vmem:[%s1659_s4] sm:$0xff] }
  0x15   :  { %v84_v31 = vrot.slane %v83_v29, 1  ;;  %1062 = vmatprep.subr.bf16.mxu0 %v1380_v60  ;;  %v87_v19 = vsel %vm72_vm1, %v69_v13, 0.0 }
  0x16   :  { %v91_v28 = vsel %vm72_vm1, %v71_v24, 0.0 }
  0x17   :  { %v85_v32 = vadd.f32 %v84_v31, %v83_v29  ;;  %391 = vperm.xlu1 %1114, %v285_v33   ;;  %v299_v29 = vld [vmem:[%s1656_s1 + $0xc0] sm:$0xff]  ;;  %v301_v31 = vld [vmem:[%s1656_s1 + $0xd0] sm:$0xff] }
  0x18   :  { %1063 = vmatpush3.bf16.msra.mxu0 %v1380_v60  ;;  %v303_v33 = vld [vmem:[%s1656_s1 + $0xe0] sm:$0xff] }
  0x19   :  { %1120 = vrsqrt.f32 %v85_v32  ;;  %vm101_vm2 = vcmp.eq.f32.partialorder %v85_v32, inf  ;;  %v104_v37 = vand.u32 2147483648, %v85_v32  ;;  %vm103_vm3 = vcmp.eq.f32.partialorder %v85_v32, 0.0  ;;  %1064 = vmatprep.subr.bf16.mxu0 %v1390_v62 }
  0x1b   :  { %396 = vperm.xlu1 %1114, %v286_v34  }
  0x1c   :  { %1065 = vmatpush3.bf16.msra.mxu0 %v1390_v62 }
  0x1f   :  { %329 = vperm.xlu1 %1114, %v279_v35   ;;  %319 = vperm.xlu0 %1115, %v277_v3   ;;  %v305_v35 = vld [vmem:[%s1656_s1 + $0xf0] sm:$0xff] }
  0x23   :  { %v1121_v36 = vpop.eup %1120  ;;  %334 = vperm.xlu1 %1114, %v280_v39   ;;  %411 = vperm.xlu0 %1115, %v289_v5  }
  0x24   :  { %v100_v38 = vmul.f32 %v1121_v36, %v85_v32 }
  0x26   :  { %v102_v40 = vsel %vm101_vm2, %v85_v32, %v100_v38 }
  0x27   :  { %v105_v41 = vsel %vm103_vm3, %v104_v37, %v102_v40  ;;  %339 = vperm.xlu1 %1114, %v281_v44  }
  0x28   :  { %v113_v43 = vadd.f32 1e-13, %v105_v41 }
  0x2a   :  { %1122 = vrcp.f32 %v113_v43 }
  0x2b   :  { %344 = vperm.xlu1 %1114, %v282_v46  }
  0x2f   :  { %401 = vperm.xlu1 %1114, %v287_v47  }
  0x33   :  { %406 = vperm.xlu1 %1114, %v288_v53  }
  0x34   :  { %v1123_v48 = vpop.eup %1122 }
  0x35   :  { %v120_v49 = vmul.f32 %v1123_v48, %v1287_v6  ;;  %v121_v50 = vmul.f32 %v1123_v48, %v1292_v7  ;;  %v122_v51 = vmul.f32 %v1123_v48, %v1297_v8  ;;  %v123_v52 = vmul.f32 %v1123_v48, %v30_v11  ;;  %v300_v6 = vld [vmem:[%s1656_s1 + $0xc8] sm:$0xff]  ;;  %v291_v7 = vld [vmem:[%s1656_s1 + $0x80] sm:$0xff]  ;;  %v293_v11 = vld [vmem:[%s1656_s1 + $0x90] sm:$0xff] }
  0x36   :  { %v1419_v8 = vld [vmem:[%s1658_s3 + $0x20] sm:$0xff]  ;;  %775 = vperm.xlu0 %1115, %v291_v7  }
  0x37   :  { %v1095_v54 = vpack.c.bf16 %v121_v50, %v120_v49  ;;  %v1098_v56 = vpack.c.bf16 %v123_v52, %v122_v51  ;;  %416 = vperm.xlu1 %1114, %v290_v57   ;;  %v68_v12 = vmul.f32 %v1419_v8, %v1419_v8 }
  0x39   :  { %1096 = vmatpush3.bf16.msra.mxu1 %v1095_v54  ;;  %v86_v18 = vsel %vm72_vm1, %v68_v12, 0.0 }
  0x3a   :  { %1097 = vmatprep.subr.bf16.mxu1 %v1225_v42  ;;  %785 = vperm.xlu0 %1115, %v293_v11   ;;  %v88_v23 = vadd.f32 %v87_v19, %v86_v18 }
  0x3b   :  { %780 = vperm.xlu1 %1114, %v292_v59  }
  0x3c   :  { %v90_v27 = vadd.f32 %v89_v25, %v88_v23 }
  0x3d   :  { %1099 = vmatpush3.bf16.msra.mxu1 %v1098_v56 }
  0x3e   :  { %1100 = vmatprep.subr.bf16.mxu1 %v1225_v42  ;;  %795 = vperm.xlu0 %1115, %v295_v16   ;;  %v92_v30 = vadd.f32 %v91_v28, %v90_v27  ;;  %v1502_v16 = vld [vmem:[%s1660_s5] sm:$0x1] }
  0x3f   :  { %790 = vperm.xlu1 %1114, %v294_v61  }
  0x40   :  { %v93_v32 = vrot.slane %v92_v30, 4 }
  0x42   :  { %805 = vperm.xlu0 %1115, %v297_v22   ;;  %v94_v34 = vadd.f32 %v93_v32, %v92_v30 }
  0x43   :  { %800 = vperm.xlu1 %1114, %v296_v63  }
  0x44   :  { %v95_v36 = vrot.slane %v94_v34, 2 }
  0x46   :  { %753 = vperm.xlu0 %1115, %v35_v26   ;;  %v96_v37 = vadd.f32 %v95_v36, %v94_v34 }
  0x47   :  { %810 = vperm.xlu1 %1114, %v298_v2  }
  0x48   :  { %v97_v38 = vrot.slane %v96_v37, 1 }
  0x4a   :  { %895 = vperm.xlu0 %1115, %v299_v29   ;;  %v98_v39 = vadd.f32 %v97_v38, %v96_v37  ;;  %v469_v29 = vlaneseq }
  0x4b   :  { %758 = vperm.xlu1 %1114, %v36_v4  }
  0x4c   :  { %1124 = vrsqrt.f32 %v98_v39  ;;  %vm108_vm5 = vcmp.eq.f32.partialorder %v98_v39, inf  ;;  %v111_v44 = vand.u32 2147483648, %v98_v39  ;;  %vm110_vm6 = vcmp.eq.f32.partialorder %v98_v39, 0.0 }
  0x4e   :  { %905 = vperm.xlu0 %1115, %v301_v31  }
  0x4f   :  { %900 = vperm.xlu1 %1114, %v300_v6  }
  0x52   :  { %915 = vperm.xlu0 %1115, %v303_v33  }
  0x53   :  { %910 = vperm.xlu1 %1114, %v302_v10  }
  0x56   :  { %925 = vperm.xlu0 %1115, %v305_v35   ;;  %v1125_v40 = vpop.eup %1124 }
  0x57   :  { %920 = vperm.xlu1 %1114, %v304_v15   ;;  %v107_v41 = vmul.f32 %v1125_v40, %v98_v39 }
  0x59   :  { %v109_v46 = vsel %vm108_vm5, %v98_v39, %v107_v41 }
  0x5a   :  { %v112_v48 = vsel %vm110_vm6, %v111_v44, %v109_v46 }
  0x5b   :  { %930 = vperm.xlu1 %1114, %v306_v21   ;;  %v114_v49 = vadd.f32 1e-13, %v112_v48 }
  0x92   :  { %v44_v43 = vpop.xlane.xlu0 %43 }
  0x93   :  { %1126 = vrsqrt.f32 %v44_v43  ;;  %vm50_vm7 = vcmp.eq.f32.partialorder %v44_v43, inf  ;;  %v53_v52 = vand.u32 2147483648, %v44_v43  ;;  %vm52_vm8 = vcmp.eq.f32.partialorder %v44_v43, 0.0 }
  0x96   :  { %v47_v47 = vpop.xlane.xlu0 %46 }
  0x97   :  { %1128 = vrsqrt.f32 %v47_v47  ;;  %vm57_vm9 = vcmp.eq.f32.partialorder %v47_v47, inf  ;;  %v60_v57 = vand.u32 2147483648, %v47_v47  ;;  %vm59_vm10 = vcmp.eq.f32.partialorder %v47_v47, 0.0 }
  0x98   :  { %1130 = vrcp.f32 %v114_v49 }
  0x9d   :  { %v1127_v50 = vpop.eup %1126 }
  0x9e   :  { %v49_v51 = vmul.f32 %v1127_v50, %v44_v43  ;;  %v320_v32 = vpop.permute.xlu0 %319 }
  0xa0   :  { %v51_v53 = vsel %vm50_vm7, %v44_v43, %v49_v51 }
  0xa1   :  { %v1129_v54 = vpop.eup %1128  ;;  %v54_v56 = vsel %vm52_vm8, %v53_v52, %v51_v53 }
  0xa2   :  { %v62_v59 = vadd.f32 1e-13, %v54_v56  ;;  %v56_v61 = vmul.f32 %v1129_v54, %v47_v47  ;;  %v1131_v4 = vpop.eup %1130  ;;  %v412_v56 = vpop.permute.xlu0 %411 }
  0xa3   :  { %v125_v5 = vmul.f32 %v1131_v4, %v1419_v8  ;;  %v126_v6 = vmul.f32 %v1131_v4, %v1424_v9  ;;  %v127_v11 = vmul.f32 %v1131_v4, %v1439_v14  ;;  %v128_v12 = vmul.f32 %v1131_v4, %v1454_v20  ;;  %v1493_v8 = vld [vmem:[%s1660_s5 + $0x1] sm:$0x1]  ;;  %v310_v20 = vpop.permute.xlu1 %309  ;;  %s1229_s5 = smov [#allocation3]  }
  0xa4   :  { %1132 = vrcp.f32 %v62_v59  ;;  %v58_v63 = vsel %vm57_vm9, %v47_v47, %v56_v61  ;;  %v673_v14 = vpack.c.bf16 %v1493_v8, %v1493_v8  ;;  %s982_s16 = sshll.u32 %s1229_s5, 4  ;;  %s983_s16 = int_to_ptr.vmem [resolvable:$true] %s982_s16 }
  0xa5   :  { %v61_v2 = vsel %vm59_vm10, %v60_v57, %v58_v63  ;;  %v1101_v10 = vpack.c.bf16 %v126_v6, %v125_v5  ;;  %v1104_v15 = vpack.c.bf16 %v128_v12, %v127_v11  ;;  %s1200_s17 = scalar_lea.vmem %s983_s16, 32  ;;  %p1205_p1 = scmp.lt.s32.totalorder %s983_s16, %s983_s16 }
  0xa6   :  { %v63_v3 = vadd.f32 1e-13, %v61_v2  ;;  %v677_v17 = vunpack.c.l.b16 %v673_v14  ;;  %p1201_p0 = scmp.ne.s32.totalorder %s983_s16, %s1200_s17  ;;  %p1206_p2 = scmp.lt.s32.totalorder %s1200_s17, %s1200_s17 }
  0xa7   :  { %v315_v21 = vpop.permute.xlu1 %314 }
  0xa8   :  { %1134 = vrcp.f32 %v63_v3  ;;  %v678_v18 = vrot.slane %v677_v17, 7  ;;  %p1207_p3 = por %p1206_p2, %p1205_p1 }
  0xaa   :  { %p1208_p4 = pnand %p1207_p3, %p1201_p0 }
  0xab   :  { %v325_v22 = vpop.permute.xlu1 %324 }
  0xae   :  { %v1133_v7 = vpop.eup %1132 }
  0xaf   :  { %v116_v13 = vmul.f32 %v1133_v7, %v1270_v0  ;;  %v1517_v23 = vpop.permute.xlu1 %381 }
  0xb1   :  { %1045 = vmatmul.mubr.msk.f32.vlgmr.msra.gmra.mrb[0].mxu1 %vm41_vm0, %v116_v13 }
  0xb2   :  { %1102 = vmatpush3.bf16.msra.mxu1 %v1101_v10  ;;  %1055 = vmatprep.mubr.msk.f32.mxu1 %vm1226_vm4, %v1227_v45  ;;  %v1135_v9 = vpop.eup %1134 }
  0xb3   :  { %1103 = vmatprep.subr.bf16.mxu1 %v1225_v42  ;;  %v118_v0 = vmul.f32 %v1135_v9, %v1275_v1  ;;  %v672_v42 = vpack.c.bf16 %v1502_v16, %v1502_v16 }
  0xb5   :  { %v676_v1 = vunpack.c.l.b16 %v672_v42 }
  0xb6   :  { %1105 = vmatpush3.bf16.msra.mxu1 %v1104_v15  ;;  %v1228_v15 = vmov 1966171168  }
  0xb7   :  { %1082 = vmatprep.subr.bf16.mxu1 %v1227_v45  ;;  %v680_v19 = vsel %vm679_vm11, %v678_v18, %v676_v1  ;;  %v730_v9 = vunpack.c.l.s4 %v1228_v15 }
  0xb9   :  { %1056 = vmatmul.mubr.msk.f32.vlgmr.msra.gmra.mrb[2].mxu1 %vm41_vm0, %v118_v0 }
  0xba   :  { %1083 = vmatpush3.bf16.msra.mxu1 %v1359_v55  ;;  %1090 = vmatprep.mubr.msk.bf16.mxu1 %vm1226_vm4, %v1227_v45  ;;  %v681_v55 = vpack.c.b16 %v680_v19, %v680_v19 }
  0xbb   :  { %1084 = vmatprep.subr.bf16.mxu1 %v1227_v45 }
  0xbe   :  { %1085 = vmatpush3.bf16.msra.mxu1 %v1369_v58  ;;  %v1519_v58 = vpop.permute.xlu1 %386 }
  0xbf   :  { %1086 = vmatprep.subr.bf16.mxu1 %v1227_v45 }
  0xc2   :  { %1087 = vmatpush3.bf16.msra.mxu1 %v1380_v60  ;;  %v1521_v24 = vpop.permute.xlu1 %391 }
  0xc3   :  { %1088 = vmatprep.subr.bf16.mxu1 %v1227_v45 }
  0xc6   :  { %1089 = vmatpush3.bf16.msra.mxu1 %v1390_v62  ;;  %v1523_v25 = vpop.permute.xlu1 %396  ;;  %v1527_v62 = vshrl.u32 %v469_v29, 7 }
  0xc8   :  { %v1532_v34 = vsub.s32 0, %v1527_v62 }
  0xc9   :  { %1091 = vmatmul.mubr.msk.bf16.vlgmr.msra.gmra.mrb[4].mxu1 %vm72_vm1, %v681_v55 }
  0xca   :  { %v330_v60 = vpop.permute.xlu1 %329  ;;  %v1542_v17 = vrot.slane %v1502_v16, %v1532_v34 }
  0xce   :  { %v335_v26 = vpop.permute.xlu1 %334 }
  0xd2   :  { %v340_v27 = vpop.permute.xlu1 %339 }
  0xd6   :  { %v345_v28 = vpop.permute.xlu1 %344 }
  0xda   :  { %v1525_v30 = vpop.permute.xlu1 %401 }
  0xde   :  { %v1529_v31 = vpop.permute.xlu1 %406 }
  0xe2   :  { %v417_v54 = vpop.permute.xlu1 %416 }
 0x184   :  { %v198_v33 = vpop.f32.mrb[0].mxu1 }
 0x185   :  { %v347_v35 = vsub.f32 %v198_v33, %v310_v20  ;;  %v348_v36 = vsub.f32 %v198_v33, %v315_v21  ;;  %v349_v37 = vsub.f32 %v198_v33, %v320_v32  ;;  %v350_v38 = vsub.f32 %v198_v33, %v325_v22  ;;  %v1046_v39 = vpop.f32.mrb[1].mxu1 }
 0x186   :  { %v351_v40 = vsub.f32 %v198_v33, %v330_v60  ;;  %v352_v41 = vsub.f32 %v198_v33, %v335_v26  ;;  %v353_v43 = vsub.f32 %v198_v33, %v340_v27  ;;  %v354_v44 = vsub.f32 %v198_v33, %v345_v28 }
 0x187   :  { %v363_v46 = vmul.f32 %v347_v35, %v347_v35  ;;  %v364_v47 = vmul.f32 %v348_v36, %v348_v36  ;;  %v365_v48 = vmul.f32 %v349_v37, %v349_v37  ;;  %v366_v49 = vmul.f32 %v350_v38, %v350_v38 }
 0x188   :  { %v367_v50 = vmul.f32 %v351_v40, %v351_v40  ;;  %v368_v51 = vmul.f32 %v352_v41, %v352_v41  ;;  %v369_v52 = vmul.f32 %v353_v43, %v353_v43  ;;  %v370_v53 = vmul.f32 %v354_v44, %v354_v44 }
 0x189   :  { %v419_v57 = vmul.f32 %v1517_v23, %v363_v46  ;;  %v420_v59 = vmul.f32 %v1519_v58, %v364_v47  ;;  %v421_v61 = vmul.f32 %v1521_v24, %v365_v48  ;;  %v422_v63 = vmul.f32 %v1523_v25, %v366_v49 }
 0x18a   :  { %v423_v2 = vmul.f32 %v1525_v30, %v367_v50  ;;  %v424_v3 = vmul.f32 %v1529_v31, %v368_v51  ;;  %v425_v4 = vmul.f32 %v412_v56, %v369_v52  ;;  %v426_v5 = vmul.f32 %v417_v54, %v370_v53 }
 0x18b   :  { %v435_v6 = vmul.f32 1.442695, %v419_v57  ;;  %v437_v7 = vmul.f32 1.442695, %v420_v59  ;;  %v439_v10 = vmul.f32 1.442695, %v421_v61  ;;  %v731_v52 = vunpack.c.0.s8 %v730_v9 }
 0x18c   :  { %v441_v11 = vmul.f32 1.442695, %v422_v63  ;;  %v443_v12 = vmul.f32 1.442695, %v423_v2  ;;  %v445_v13 = vmul.f32 1.442695, %v424_v3 }
 0x18d   :  { %1136 = vpow2.f32 %v435_v6  ;;  %v447_v14 = vmul.f32 1.442695, %v425_v4  ;;  %v449_v0 = vmul.f32 1.442695, %v426_v5  ;;  %v271_v42 = vpop.f32.mrb[2].mxu1  ;;  %v1554_v61 = vsub.s32 %v731_v52, %v1527_v62  ;;  %v1590_v52 = vpop.permute.xlu1 %780 }
 0x18e   :  { %1138 = vpow2.f32 %v437_v7  ;;  %v355_v1 = vsub.f32 %v271_v42, %v310_v20  ;;  %v356_v18 = vsub.f32 %v271_v42, %v315_v21  ;;  %v357_v19 = vsub.f32 %v271_v42, %v320_v32  ;;  %v1057_v55 = vpop.f32.mrb[3].mxu1 }
 0x18f   :  { %1140 = vpow2.f32 %v439_v10  ;;  %v358_v29 = vsub.f32 %v271_v42, %v325_v22  ;;  %v359_v33 = vsub.f32 %v271_v42, %v330_v60  ;;  %v360_v35 = vsub.f32 %v271_v42, %v335_v26 }
 0x190   :  { %1142 = vpow2.f32 %v441_v11  ;;  %v361_v36 = vsub.f32 %v271_v42, %v340_v27  ;;  %v362_v37 = vsub.f32 %v271_v42, %v345_v28  ;;  %v371_v38 = vmul.f32 %v355_v1, %v355_v1 }
 0x191   :  { %1144 = vpow2.f32 %v443_v12  ;;  %v372_v39 = vmul.f32 %v356_v18, %v356_v18  ;;  %v373_v40 = vmul.f32 %v357_v19, %v357_v19  ;;  %v374_v41 = vmul.f32 %v358_v29, %v358_v29 }
 0x192   :  { %1146 = vpow2.f32 %v445_v13  ;;  %v375_v16 = vmul.f32 %v359_v33, %v359_v33  ;;  %v376_v43 = vmul.f32 %v360_v35, %v360_v35  ;;  %v377_v44 = vmul.f32 %v361_v36, %v361_v36 }
 0x193   :  { %1148 = vpow2.f32 %v447_v14  ;;  %v378_v20 = vmul.f32 %v362_v37, %v362_v37  ;;  %v427_v21 = vmul.f32 %v1517_v23, %v371_v38  ;;  %v428_v22 = vmul.f32 %v1519_v58, %v372_v39 }
 0x194   :  { %1150 = vpow2.f32 %v449_v0  ;;  %v429_v60 = vmul.f32 %v1521_v24, %v373_v40  ;;  %v430_v26 = vmul.f32 %v1523_v25, %v374_v41  ;;  %v431_v27 = vmul.f32 %v1525_v30, %v375_v16 }
 0x195   :  { %v432_v28 = vmul.f32 %v1529_v31, %v376_v43  ;;  %v433_v32 = vmul.f32 %v412_v56, %v377_v44  ;;  %v451_v46 = vmul.f32 1.442695, %v427_v21  ;;  %v434_v47 = vmul.f32 %v417_v54, %v378_v20 }
 0x196   :  { %v453_v48 = vmul.f32 1.442695, %v428_v22  ;;  %v455_v49 = vmul.f32 1.442695, %v429_v60  ;;  %v457_v50 = vmul.f32 1.442695, %v430_v26  ;;  %v476_v62 = vrot.slane %v1493_v8, %v1532_v34 }
 0x197   :  { %v1137_v51 = vpop.eup %1136  ;;  %1152 = vpow2.f32 %v451_v46  ;;  %v459_v23 = vmul.f32 1.442695, %v431_v27  ;;  %v461_v53 = vmul.f32 1.442695, %v432_v28  ;;  %v463_v30 = vmul.f32 1.442695, %v433_v32 }
 0x198   :  { %v1139_v58 = vpop.eup %1138  ;;  %1154 = vpow2.f32 %v453_v48  ;;  %v479_v24 = vmul.f32 %v1137_v51, %v1542_v17  ;;  %v465_v54 = vmul.f32 1.442695, %v434_v47 }
 0x199   :  { %v1141_v25 = vpop.eup %1140  ;;  %1156 = vpow2.f32 %v455_v49  ;;  %v480_v31 = vmul.f32 %v1139_v58, %v1542_v17 }
 0x19a   :  { %v1143_v56 = vpop.eup %1142  ;;  %1158 = vpow2.f32 %v457_v50  ;;  %v481_v57 = vmul.f32 %v1141_v25, %v1542_v17 }
 0x19b   :  { %v1145_v59 = vpop.eup %1144  ;;  %1160 = vpow2.f32 %v459_v23  ;;  %v495_v63 = vpack.c.bf16 %v480_v31, %v479_v24  ;;  %v482_v2 = vmul.f32 %v1143_v56, %v1542_v17  ;;  %v776_v23 = vpop.permute.xlu0 %775 }
 0x19c   :  { %v1147_v3 = vpop.eup %1146  ;;  %1162 = vpow2.f32 %v461_v53  ;;  %v719_v4 = vpop.f32.mrb[4].mxu1  ;;  %v483_v5 = vmul.f32 %v1145_v59, %v1542_v17 }
 0x19d   :  { %v1149_v6 = vpop.eup %1148  ;;  %1164 = vpow2.f32 %v463_v30  ;;  %vm725_vm12 = vcmp.gt.f32.partialorder %v719_v4, 0.0  ;;  %503 = vst.msk [vmem:[#allocation2] sm:$0xff] %vm72_vm1, %v495_v63  ;;  %v496_v7 = vpack.c.bf16 %v482_v2, %v481_v57  ;;  %v484_v10 = vmul.f32 %v1147_v3, %v1542_v17  ;;  %v1092_v11 = vpop.f32.mrb[5].mxu1 }
 0x19e   :  { %v1151_v12 = vpop.eup %1150  ;;  %1166 = vpow2.f32 %v465_v54  ;;  %v1008_v13 = vsel %vm725_vm12, 1.0, %v1227_v45  ;;  %v485_v15 = vmul.f32 %v1149_v6, %v1542_v17  ;;  %v722_v9 = vpop.f32.mrb[6].mxu1 }
 0x19f   :  { %v1565_v14 = vrot.slane %v1008_v13, %v1554_v61  ;;  %504 = vst.msk [vmem:[#allocation2 + $0x8] sm:$0xff] %vm72_vm1, %v496_v7  ;;  %v497_v0 = vpack.c.bf16 %v484_v10, %v483_v5  ;;  %v486_v42 = vmul.f32 %v1151_v12, %v1542_v17  ;;  %v1093_v1 = vpop.f32.mrb[7].mxu1  ;;  %v786_v58 = vpop.permute.xlu0 %785 }
 0x1a0   :  { %v791_v53 = vpop.permute.xlu1 %790 }
 0x1a1   :  { %v1153_v18 = vpop.eup %1152  ;;  %v736_v19 = vcombine.high %v1565_v14, %v1565_v14  ;;  %v743_v8 = vrot.slane %v1565_v14, %v1554_v61  ;;  %505 = vst.msk [vmem:[#allocation2 + $0x10] sm:$0xff] %vm72_vm1, %v497_v0  ;;  %v498_v45 = vpack.c.bf16 %v486_v42, %v485_v15 }
 0x1a2   :  { %v1155_v55 = vpop.eup %1154  ;;  %v487_v29 = vmul.f32 %v1153_v18, %v476_v62 }
 0x1a3   :  { %v1157_v33 = vpop.eup %1156  ;;  %v1575_v35 = vrot.slane %v736_v19, %v1554_v61  ;;  %506 = vst.msk [vmem:[#allocation2 + $0x18] sm:$0xff] %vm72_vm1, %v498_v45  ;;  %v488_v17 = vmul.f32 %v1155_v55, %v476_v62  ;;  %v1592_v24 = vpop.permute.xlu0 %795  ;;  %v764_v19 = vrot.slane %v743_v8, %v1532_v34 }
 0x1a4   :  { %v1159_v36 = vpop.eup %1158  ;;  %v519_v37 = vld [vmem:[#allocation2] sm:$0xff]  ;;  %v489_v38 = vmul.f32 %v1157_v33, %v476_v62  ;;  %v1594_v25 = vpop.permute.xlu1 %800 }
 0x1a5   :  { %v1161_v39 = vpop.eup %1160  ;;  %1066 = vmatprep.mubr.msk.bf16.mxu0 %vm72_vm1, %v519_v37  ;;  %v499_v40 = vpack.c.bf16 %v488_v17, %v487_v29  ;;  %v490_v41 = vmul.f32 %v1159_v36, %v476_v62 }
 0x1a6   :  { %v1163_v16 = vpop.eup %1162  ;;  %v520_v43 = vld [vmem:[#allocation2 + $0x8] sm:$0xff]  ;;  %v491_v44 = vmul.f32 %v1161_v39, %v476_v62 }
 0x1a7   :  { %v1165_v20 = vpop.eup %1164  ;;  %1067 = vmatmul.mubr.msk.bf16.vlgmr.msra.gmra.mrb[0].mxu0 %vm72_vm1, %v520_v43  ;;  %507 = vst.msk [vmem:[#allocation2 + $0x20] sm:$0xff] %vm72_vm1, %v499_v40  ;;  %v500_v21 = vpack.c.bf16 %v490_v41, %v489_v38  ;;  %v492_v22 = vmul.f32 %v1163_v16, %v476_v62  ;;  %v1596_v54 = vpop.permute.xlu0 %805 }
 0x1a8   :  { %v1167_v60 = vpop.eup %1166  ;;  %v521_v26 = vld [vmem:[#allocation2 + $0x10] sm:$0xff]  ;;  %v493_v27 = vmul.f32 %v1165_v20, %v476_v62  ;;  %v1598_v4 = vpop.permute.xlu1 %810 }
 0x1a9   :  { %1070 = vmatprep.mubr.msk.bf16.mxu0 %vm72_vm1, %v521_v26  ;;  %508 = vst.msk [vmem:[#allocation2 + $0x28] sm:$0xff] %vm72_vm1, %v500_v21  ;;  %v501_v28 = vpack.c.bf16 %v492_v22, %v491_v44  ;;  %v494_v32 = vmul.f32 %v1167_v60, %v476_v62 }
 0x1aa   :  { %v522_v47 = vld [vmem:[#allocation2 + $0x18] sm:$0xff] }
 0x1ab   :  { %509 = vst.msk [vmem:[#allocation2 + $0x30] sm:$0xff] %vm72_vm1, %v501_v28  ;;  %v502_v46 = vpack.c.bf16 %v494_v32, %v493_v27  ;;  %v754_v11 = vpop.permute.xlu0 %753 }
 0x1ac   :  { %v1602_v15 = vpop.permute.xlu1 %758  ;;  %v771_v39 = vmul.f32 %v764_v19, %v754_v11 }
 0x1ad   :  { %510 = vst.msk [vmem:[#allocation2 + $0x38] sm:$0xff] %vm72_vm1, %v502_v46 }
 0x1ae   :  { %v523_v48 = vld [vmem:[#allocation2 + $0x20] sm:$0xff] }
 0x1af   :  { %1071 = vmatmul.mubr.msk.bf16.gmra.mrb[4].mxu0 %vm72_vm1, %v522_v47  ;;  %v1611_v33 = vpop.permute.xlu0 %895 }
 0x1b0   :  { %1074 = vmatprep.mubr.msk.bf16.mxu0 %vm72_vm1, %v523_v48  ;;  %v524_v49 = vld [vmem:[#allocation2 + $0x28] sm:$0xff]  ;;  %v1613_v38 = vpop.permute.xlu1 %900 }
 0x1b2   :  { %v525_v50 = vld [vmem:[#allocation2 + $0x30] sm:$0xff] }
 0x1b3   :  { %v1615_v46 = vpop.permute.xlu0 %905 }
 0x1b4   :  { %v526_v51 = vld [vmem:[#allocation2 + $0x38] sm:$0xff] }
 0x1b7   :  { %1075 = vmatmul.mubr.msk.bf16.gmra.mrb[8].mxu0 %vm72_vm1, %v524_v49 }
 0x1b8   :  { %1078 = vmatprep.mubr.msk.bf16.mxu0 %vm72_vm1, %v525_v50 }
 0x1bf   :  { %1079 = vmatmul.mubr.msk.bf16.gmra.mrb[12].mxu0 %vm72_vm1, %v526_v51 }
 0x27a   :  { %v1068_v30 = vpop.f32.mrb[0].mxu0 }
 0x27b   :  { %v815_v31 = vmul.f32 %v1068_v30, %v786_v58  ;;  %v609_v56 = vpop.f32.mrb[1].mxu0 }
 0x27c   :  { %v813_v57 = vmul.f32 %v776_v23, %v609_v56  ;;  %v1069_v59 = vpop.f32.mrb[2].mxu0 }
 0x27d   :  { %v831_v63 = vmax.f32 %v815_v31, 1e-10  ;;  %v816_v2 = vmul.f32 %v1069_v59, %v791_v53  ;;  %v612_v3 = vpop.f32.mrb[3].mxu0 }
 0x27e   :  { %v829_v5 = vmax.f32 %v813_v57, 1e-10  ;;  %v814_v6 = vmul.f32 %v1590_v52, %v612_v3 }
 0x27f   :  { %1168 = vlog2.f32 %v831_v63  ;;  %v832_v7 = vmax.f32 %v816_v2, 1e-10 }
 0x280   :  { %1170 = vlog2.f32 %v829_v5  ;;  %v830_v10 = vmax.f32 %v814_v6, 1e-10 }
 0x281   :  { %1172 = vlog2.f32 %v832_v7 }
 0x282   :  { %1174 = vlog2.f32 %v830_v10  ;;  %v1072_v12 = vpop.f32.mrb[4].mxu0  ;;  %v1624_v10 = vpop.permute.xlu0 %915 }
 0x283   :  { %v819_v62 = vmul.f32 %v1072_v12, %v1596_v54  ;;  %v625_v13 = vpop.f32.mrb[5].mxu0 }
 0x284   :  { %v817_v9 = vmul.f32 %v1592_v24, %v625_v13  ;;  %v1073_v0 = vpop.f32.mrb[6].mxu0 }
 0x285   :  { %v835_v42 = vmax.f32 %v819_v62, 1e-10  ;;  %v820_v1 = vmul.f32 %v1073_v0, %v1598_v4  ;;  %v628_v18 = vpop.f32.mrb[7].mxu0 }
 0x286   :  { %v833_v45 = vmax.f32 %v817_v9, 1e-10  ;;  %v818_v55 = vmul.f32 %v1594_v25, %v628_v18 }
 0x287   :  { %1176 = vlog2.f32 %v835_v42  ;;  %v836_v29 = vmax.f32 %v820_v1, 1e-10 }
 0x288   :  { %1178 = vlog2.f32 %v833_v45  ;;  %v834_v17 = vmax.f32 %v818_v55, 1e-10 }
 0x289   :  { %v1169_v36 = vpop.eup %1168  ;;  %1180 = vlog2.f32 %v836_v29 }
 0x28a   :  { %v1171_v37 = vpop.eup %1170  ;;  %v850_v40 = vmul.f32 0.6931472, %v1169_v36  ;;  %1182 = vlog2.f32 %v834_v17  ;;  %v1076_v41 = vpop.f32.mrb[8].mxu0 }
 0x28b   :  { %v1173_v61 = vpop.eup %1172  ;;  %v846_v14 = vmul.f32 0.6931472, %v1171_v37  ;;  %v823_v8 = vmul.f32 %v1076_v41, %v786_v58  ;;  %v641_v16 = vpop.f32.mrb[9].mxu0 }
 0x28c   :  { %v1175_v43 = vpop.eup %1174  ;;  %v879_v44 = vmul.f32 %v850_v40, %v771_v39  ;;  %v852_v20 = vmul.f32 0.6931472, %v1173_v61  ;;  %v821_v21 = vmul.f32 %v776_v23, %v641_v16  ;;  %v1077_v22 = vpop.f32.mrb[10].mxu0 }
 0x28d   :  { %v877_v60 = vmul.f32 %v846_v14, %v771_v39  ;;  %v848_v26 = vmul.f32 0.6931472, %v1175_v43  ;;  %v839_v27 = vmax.f32 %v823_v8, 1e-10  ;;  %v824_v28 = vmul.f32 %v1077_v22, %v791_v53  ;;  %v644_v32 = vpop.f32.mrb[11].mxu0  ;;  %v1618_v58 = vpop.permute.xlu1 %910 }
 0x28e   :  { %v880_v47 = vmul.f32 %v852_v20, %v771_v39  ;;  %v837_v48 = vmax.f32 %v821_v21, 1e-10  ;;  %v822_v49 = vmul.f32 %v1590_v52, %v644_v32  ;;  %v935_v52 = vmul.f32 %v1615_v46, %v879_v44  ;;  %v926_v43 = vpop.permute.xlu0 %925 }
 0x28f   :  { %v878_v50 = vmul.f32 %v848_v26, %v771_v39  ;;  %1184 = vlog2.f32 %v839_v27  ;;  %v840_v51 = vmax.f32 %v824_v28, 1e-10  ;;  %v933_v31 = vmul.f32 %v1611_v33, %v877_v60 }
 0x290   :  { %1186 = vlog2.f32 %v837_v48  ;;  %v838_v30 = vmax.f32 %v822_v49, 1e-10  ;;  %v936_v11 = vmul.f32 %v1618_v58, %v880_v47 }
 0x291   :  { %v1177_v23 = vpop.eup %1176  ;;  %v934_v56 = vmul.f32 %v1613_v38, %v878_v50  ;;  %1188 = vlog2.f32 %v840_v51  ;;  %v1628_v45 = vpop.permute.xlu1 %920 }
 0x292   :  { %v1179_v53 = vpop.eup %1178  ;;  %v858_v57 = vmul.f32 0.6931472, %v1177_v23  ;;  %1190 = vlog2.f32 %v838_v30  ;;  %v1080_v59 = vpop.f32.mrb[12].mxu0 }
 0x293   :  { %v1181_v63 = vpop.eup %1180  ;;  %v949_v2 = vadd.f32 %v934_v56, %v933_v31  ;;  %v854_v3 = vmul.f32 0.6931472, %v1179_v53  ;;  %v827_v5 = vmul.f32 %v1080_v59, %v1596_v54  ;;  %v657_v6 = vpop.f32.mrb[13].mxu0  ;;  %v768_v54 = vrot.slane %v1575_v35, %v1532_v34 }
 0x294   :  { %v1183_v7 = vpop.eup %1182  ;;  %v883_v12 = vmul.f32 %v858_v57, %v771_v39  ;;  %v860_v62 = vmul.f32 0.6931472, %v1181_v63  ;;  %v825_v13 = vmul.f32 %v1592_v24, %v657_v6  ;;  %v1081_v9 = vpop.f32.mrb[14].mxu0 }
 0x295   :  { %v950_v0 = vadd.f32 %v949_v2, %v935_v52  ;;  %v881_v42 = vmul.f32 %v854_v3, %v771_v39  ;;  %v856_v1 = vmul.f32 0.6931472, %v1183_v7  ;;  %v843_v18 = vmax.f32 %v827_v5, 1e-10  ;;  %v660_v19 = vpop.f32.mrb[15].mxu0  ;;  %v931_v60 = vpop.permute.xlu1 %930 }
 0x296   :  { %v884_v55 = vmul.f32 %v860_v62, %v771_v39  ;;  %v841_v29 = vmax.f32 %v825_v13, 1e-10  ;;  %v828_v17 = vmul.f32 %v1081_v9, %v1598_v4  ;;  %v826_v41 = vmul.f32 %v1594_v25, %v660_v19 }
 0x297   :  { %v937_v36 = vmul.f32 %v1624_v10, %v881_v42  ;;  %v951_v37 = vadd.f32 %v950_v0, %v936_v11  ;;  %v882_v40 = vmul.f32 %v856_v1, %v771_v39  ;;  %1192 = vlog2.f32 %v843_v18 }
 0x298   :  { %1194 = vlog2.f32 %v841_v29  ;;  %v844_v24 = vmax.f32 %v828_v17, 1e-10  ;;  %v772_v34 = vmul.f32 %v768_v54, %v1602_v15  ;;  %v842_v4 = vmax.f32 %v826_v41, 1e-10 }
 0x299   :  { %v1185_v61 = vpop.eup %1184  ;;  %v952_v14 = vadd.f32 %v951_v37, %v937_v36  ;;  %v938_v8 = vmul.f32 %v1628_v45, %v882_v40  ;;  %v939_v20 = vmul.f32 %v926_v43, %v883_v12  ;;  %v940_v25 = vmul.f32 %v931_v60, %v884_v55 }
 0x29a   :  { %v1187_v16 = vpop.eup %1186  ;;  %v866_v35 = vmul.f32 0.6931472, %v1185_v61  ;;  %1196 = vlog2.f32 %v844_v24 }
 0x29b   :  { %v1189_v44 = vpop.eup %1188  ;;  %v953_v21 = vadd.f32 %v952_v14, %v938_v8  ;;  %v862_v39 = vmul.f32 0.6931472, %v1187_v16  ;;  %1198 = vlog2.f32 %v842_v4 }
 0x29c   :  { %v1191_v22 = vpop.eup %1190  ;;  %v887_v26 = vmul.f32 %v866_v35, %v772_v34  ;;  %v868_v27 = vmul.f32 0.6931472, %v1189_v44 }
 0x29d   :  { %v954_v28 = vadd.f32 %v953_v21, %v939_v20  ;;  %v885_v32 = vmul.f32 %v862_v39, %v772_v34  ;;  %v864_v47 = vmul.f32 0.6931472, %v1191_v22 }
 0x29e   :  { %v888_v48 = vmul.f32 %v868_v27, %v772_v34  ;;  %v943_v53 = vmul.f32 %v1615_v46, %v887_v26 }
 0x29f   :  { %v955_v49 = vadd.f32 %v954_v28, %v940_v25  ;;  %v886_v50 = vmul.f32 %v864_v47, %v772_v34  ;;  %v941_v51 = vmul.f32 %v1611_v33, %v885_v32 }
 0x2a0   :  { %v944_v2 = vmul.f32 %v1618_v58, %v888_v48 }
 0x2a1   :  { %v1193_v15 = vpop.eup %1192  ;;  %v942_v30 = vmul.f32 %v1613_v38, %v886_v50  ;;  %v956_v23 = vrot.slane %v955_v49, 4 }
 0x2a2   :  { %v1195_v31 = vpop.eup %1194  ;;  %v874_v56 = vmul.f32 0.6931472, %v1193_v15 }
 0x2a3   :  { %v962_v57 = vadd.f32 %v942_v30, %v941_v51  ;;  %v870_v59 = vmul.f32 0.6931472, %v1195_v31  ;;  %v957_v63 = vadd.f32 %v956_v23, %v955_v49 }
 0x2a4   :  { %v1197_v52 = vpop.eup %1196  ;;  %v891_v3 = vmul.f32 %v874_v56, %v772_v34 }
 0x2a5   :  { %v963_v5 = vadd.f32 %v962_v57, %v943_v53  ;;  %v889_v6 = vmul.f32 %v870_v59, %v772_v34  ;;  %v876_v7 = vmul.f32 0.6931472, %v1197_v52  ;;  %v958_v11 = vrot.slane %v957_v63, 2  ;;  %v1199_v12 = vpop.eup %1198 }
 0x2a6   :  { %v872_v13 = vmul.f32 0.6931472, %v1199_v12  ;;  %v947_v19 = vmul.f32 %v926_v43, %v891_v3 }
 0x2a7   :  { %v945_v33 = vmul.f32 %v1624_v10, %v889_v6  ;;  %v964_v38 = vadd.f32 %v963_v5, %v944_v2  ;;  %v892_v62 = vmul.f32 %v876_v7, %v772_v34  ;;  %v959_v9 = vadd.f32 %v958_v11, %v957_v63 }
 0x2a8   :  { %v890_v46 = vmul.f32 %v872_v13, %v772_v34 }
 0x2a9   :  { %v965_v0 = vadd.f32 %v964_v38, %v945_v33  ;;  %v960_v42 = vrot.slane %v959_v9, 1  ;;  %v948_v54 = vmul.f32 %v931_v60, %v892_v62 }
 0x2aa   :  { %v946_v1 = vmul.f32 %v1628_v45, %v890_v46 }
 0x2ab   :  { %v961_v18 = vadd.f32 %v960_v42, %v959_v9 }
 0x2ac   :  { %v966_v58 = vadd.f32 %v965_v0, %v946_v1 }
 0x2ad   :  { %975 = vst [vmem:[#allocation3] sm:$0x1] %v961_v18 }
 0x2ae   :  { %v967_v55 = vadd.f32 %v966_v58, %v947_v19 }
 0x2b0   :  { %v968_v29 = vadd.f32 %v967_v55, %v948_v54 }
 0x2b2   :  { %v969_v17 = vrot.slane %v968_v29, 4 }
 0x2b4   :  { %v970_v36 = vadd.f32 %v969_v17, %v968_v29 }
 0x2b6   :  { %v971_v37 = vrot.slane %v970_v36, 2 }
 0x2b8   :  { %v972_v10 = vadd.f32 %v971_v37, %v970_v36 }
 0x2ba   :  { %v973_v40 = vrot.slane %v972_v10, 1 }
 0x2bc   :  { %v974_v24 = vadd.f32 %v973_v40, %v972_v10 }
 0x2be   :  { %976 = vst [vmem:[#allocation3 + $0x1] sm:$0x1] %v974_v24 }
 0x2bf   :  { %1211 = shalt.err (!%p1208_p4)
}
 0x2c0   :  { %s1212_s20 = scalar_lea.hbm %s1661_s6, 32 }
 0x2c1   :  { %p1213_p5 = scmp.ne.s32.totalorder %s1661_s6, %s1212_s20  ;;  %p1216_p6 = scmp.lt.u32.totalorder %s1212_s20, %s1661_s6 }
 0x2c3   :  { %p1218_p7 = pnand %p1216_p6, %p1213_p5 }
 0x2c5   :  { %1221 = shalt.err (!%p1218_p7)
}
 0x2c6   :  { %s1230_s25 = smov 16   ;;  %s1231_s26 = smov 1  }
 0x2c7   :  { %988 = dma.vmem_to_hbm [thread:$0]  %s983_s16, 32, %s1661_s6, [#allocation4], %s1230_s25, %s1230_s25, %s1231_s26  }
 0x2c8   :  { %1222 = dma.done.wait [#allocation4], 32  }
 0x2c9   :  { %1223 = vsyncadd [#allocation4], 4294967264 }
 0x2ca   :  { %992 = vsyncpa [#allocation4], 1 }

</bundles_post_ra>
